<compile_context>
chip_gen: v5e
topology: v5e:2x2
jax: 0.10.0
libtpu: 0.0.40
codegen_flags: <defaults>
</compile_context>

<pallas_src>
import functools

import jax
import jax.numpy as jnp
from jax import lax
from jax.experimental import pallas as pl
from jax.experimental.pallas import tpu as pltpu

_EPS = 1e-5


def _layer_norm(x, g, b):
    mu = jnp.mean(x, axis=-1, keepdims=True)
    xc = x - mu
    var = jnp.mean(xc * xc, axis=-1, keepdims=True)
    return xc * lax.rsqrt(var + _EPS) * g + b


# ---------------------------------------------------------------------------
# Kernel A: LN1 + fused Q / K / V projections (lane-dense (B, S, D) outputs).
# vec_ref rows: [ln1_g, ln1_b, bq*scaling, bk, bv]
# ---------------------------------------------------------------------------
def _qkv_kernel(xt_ref, vec_ref, wq_ref, wk_ref, wv_ref, q_ref, k_ref, v_ref):
    x = xt_ref[0]                                           # (TS, D) f32
    h = _layer_norm(x, vec_ref[0:1, :], vec_ref[1:2, :])
    hb = h.astype(jnp.bfloat16)
    q = jnp.dot(hb, wq_ref[...], preferred_element_type=jnp.float32) + vec_ref[2:3, :]
    k = jnp.dot(hb, wk_ref[...], preferred_element_type=jnp.float32) + vec_ref[3:4, :]
    v = jnp.dot(hb, wv_ref[...], preferred_element_type=jnp.float32) + vec_ref[4:5, :]
    q_ref[0] = q.astype(jnp.bfloat16)                       # scaled Q, MXU operand only
    k_ref[0] = k                                            # f32 cache
    v_ref[0] = v


# ---------------------------------------------------------------------------
# Kernel B: attention (per 128-lane head group) + out_proj + residual + LN2 +
# FFN (tanh GELU).  vec_ref rows: [ln2_g, ln2_b, bo, b2]
# ---------------------------------------------------------------------------
def _attn_ffn_kernel(H, HD, G,
                     xr_ref, q_ref, k_ref, v_ref, mask_ref,
                     vec_ref, b1_ref, wo_ref, w1_ref, w2_ref,
                     out_ref, acc_ref):
    xr = xr_ref[0]                                          # (TS, D) f32 residual
    qt = q_ref[0]                                           # (TS, D) bf16
    mask = mask_ref[0]                                      # (TS, S) f32 additive

    GW = G * HD
    num_groups = H // G
    for g in range(num_groups):
        off = g * GW
        qg = qt[:, off:off + GW]                            # (TS, GW) bf16, aligned
        # Ref slices (not materialized full values): aligned (S, GW) loads.
        kg = k_ref[0, :, off:off + GW].astype(jnp.bfloat16)
        vg = v_ref[0, :, off:off + GW].astype(jnp.bfloat16)
        outs = []
        for hh in range(G):
            hs = slice(hh * HD, (hh + 1) * HD)
            qh = qg[:, hs]
            kh = kg[:, hs]
            vh = vg[:, hs]
            # QK^T contracting last dims of both operands (no transpose).
            sc = lax.dot_general(qh, kh, (((1,), (1,)), ((), ())),
                                 preferred_element_type=jnp.float32) + mask
            sc = sc - jnp.max(sc, axis=-1, keepdims=True)
            p = jnp.exp(sc)                                 # (TS, S) f32
            inv = pl.reciprocal(jnp.sum(p, axis=-1, keepdims=True), approx=True)
            oh = jnp.dot(p.astype(jnp.bfloat16), vh,
                         preferred_element_type=jnp.float32) * inv
            outs.append(oh)
        og = outs[0] if G == 1 else jnp.concatenate(outs, axis=-1)
        acc_ref[:, off:off + GW] = og.astype(jnp.bfloat16)  # aligned store

    attn = jnp.dot(acc_ref[...], wo_ref[...],
                   preferred_element_type=jnp.float32) + vec_ref[2:3, :]
    x1 = xr + attn                                          # dropout == identity (eval)

    h2 = _layer_norm(x1, vec_ref[0:1, :], vec_ref[1:2, :])
    ff = jnp.dot(h2.astype(jnp.bfloat16), w1_ref[...],
                 preferred_element_type=jnp.float32) + b1_ref[...]
    ff = jax.nn.gelu(ff, approximate=True)                  # tanh GELU (EUP-cheap)
    ff = jnp.dot(ff.astype(jnp.bfloat16), w2_ref[...],
                 preferred_element_type=jnp.float32) + vec_ref[3:4, :]
    out_ref[0] = x1 + ff


def _pick_tile(S, preferred=256):
    if S <= preferred:
        return S
    for ts in range(preferred, 7, -8):
        if S % ts == 0:
            return ts
    return S


def _head_group(H, HD):
    """Heads per group so the group lane width is 128-aligned when possible."""
    if HD % 128 == 0:
        return 1
    if 128 % HD == 0:
        if H * HD <= 128:
            return H
        g = 128 // HD
        if H % g == 0:
            return g
    return 1


def biogpt_decoder_layer(x, attn_mask, params, num_heads, q_tile=256,
                         cache_layout="bshd"):
    """x: (B, S, D) f32; attn_mask: (Bm, 1, S, S) additive, Bm in {1, B}."""
    B, S, D = x.shape
    H = num_heads
    HD = D // H
    I = params["w1"].shape[0]
    TS = _pick_tile(S, q_tile)
    NT = S // TS
    G = _head_group(H, HD)

    f32, bf16 = jnp.float32, jnp.bfloat16
    scaling = HD ** -0.5

    # ---- host-side weight prep: [out,in] -> [in,out], bf16, fold q scaling ----
    wq_t = (params["wq"].T * scaling).astype(bf16)
    wk_t = params["wk"].T.astype(bf16)
    wv_t = params["wv"].T.astype(bf16)
    wo_t = params["wo"].T.astype(bf16)
    w1_t = params["w1"].T.astype(bf16)                      # (D, I)
    w2_t = params["w2"].T.astype(bf16)                      # (I, D)

    # Packed small vectors (one DMA instead of ~10 tiny ones).
    vec_a = jnp.concatenate(
        [params["ln1_g"], params["ln1_b"], params["bq"] * scaling,
         params["bk"], params["bv"]], axis=0).astype(f32)   # (5, D)
    vec_b = jnp.concatenate(
        [params["ln2_g"], params["ln2_b"], params["bo"], params["b2"]],
        axis=0).astype(f32)                                 # (4, D)
    b1 = params["b1"].astype(f32)                           # (1, I)

    mask3 = attn_mask[:, 0].astype(f32)                     # (Bm, S, S)
    Bm = mask3.shape[0]
    assert Bm in (1, B), "attention mask batch must be 1 or B"

    try:
        phys = int(pltpu.get_tpu_info().vmem_capacity_bytes)
    except Exception:
        phys = 128 << 20
    cap = min(100 << 20, int(phys * 0.85))

    def _run(single_buffer):
        const_kw = {"pipeline_mode": pl.Buffered(1)} if single_buffer else {}
        wmul = 1 if single_buffer else 2

        def const_spec(shape):
            return pl.BlockSpec(shape, lambda b, t: (0,) * len(shape), **const_kw)

        # ---------------- kernel A: LN1 + Q/K/V projections ----------------
        vmem_a = int(2 * TS * D * 4                       # x tile (double)
                     + wmul * (3 * D * D * 2 + 5 * D * 4)  # weights + vec
                     + 2 * TS * D * (2 + 4 + 4)            # q/k/v out (double)
                     + 5 * TS * D * 4)                     # live f32 temporaries
        cost_a = pl.CostEstimate(
            flops=int(6 * B * S * D * D),
            transcendentals=0,
            bytes_accessed=int(B * S * D * (4 + 2 + 4 + 4)
                               + 3 * D * D * 2 + 5 * D * 4))

        q_l, k_l, v_l = pl.pallas_call(
            _qkv_kernel,
            out_shape=(jax.ShapeDtypeStruct((B, S, D), bf16),
                       jax.ShapeDtypeStruct((B, S, D), f32),
                       jax.ShapeDtypeStruct((B, S, D), f32)),
            grid_spec=pltpu.PrefetchScalarGridSpec(
                num_scalar_prefetch=0,
                grid=(B, NT),
                in_specs=[
                    pl.BlockSpec((1, TS, D), lambda b, t: (b, t, 0)),
                    const_spec((5, D)),
                    const_spec((D, D)), const_spec((D, D)), const_spec((D, D)),
                ],
                out_specs=(
                    pl.BlockSpec((1, TS, D), lambda b, t: (b, t, 0)),
                    pl.BlockSpec((1, TS, D), lambda b, t: (b, t, 0)),
                    pl.BlockSpec((1, TS, D), lambda b, t: (b, t, 0)),
                )),
            compiler_params=pltpu.CompilerParams(
                dimension_semantics=("parallel", "parallel"),
                vmem_limit_bytes=min(max(vmem_a, 16 << 20), cap)),
            cost_estimate=cost_a,
        )(x, vec_a, wq_t, wk_t, wv_t)

        # ------------- kernel B: attention + out_proj + FFN ----------------
        if Bm == 1:
            mask_spec = pl.BlockSpec((1, TS, S), lambda b, t: (0, t, 0))
        else:
            mask_spec = pl.BlockSpec((1, TS, S), lambda b, t: (b, t, 0))

        vmem_b = int(2 * TS * D * (4 + 2)                 # x + q tiles (double)
                     + 2 * 2 * S * D * 4                  # resident K/V (double)
                     + 2 * TS * S * 4                     # mask tile (double)
                     + 2 * TS * D * 4                     # out tile (double)
                     + wmul * ((D * D + 2 * D * I) * 2 + (4 * D + I) * 4)
                     + TS * D * 2                         # acc scratch (bf16)
                     + 4 * TS * S * 4                     # score/exp temporaries
                     + TS * I * 4                         # fc1 intermediate
                     + 4 * TS * D * 4)                    # misc f32 temporaries
        cost_b = pl.CostEstimate(
            flops=int(B * (2 * S * D * D + 4 * S * S * D + 4 * S * D * I)),
            transcendentals=int(B * (H * S * S + S * I)),
            bytes_accessed=int(B * S * D * (4 + 2 + 4 + 4 + 4) + Bm * S * S * 4
                               + (D * D + 2 * D * I) * 2 + (4 * D + I) * 4))

        kernel_b = functools.partial(_attn_ffn_kernel, H, HD, G)
        out = pl.pallas_call(
            kernel_b,
            out_shape=jax.ShapeDtypeStruct((B, S, D), f32),
            grid_spec=pltpu.PrefetchScalarGridSpec(
                num_scalar_prefetch=0,
                grid=(B, NT),
                in_specs=[
                    pl.BlockSpec((1, TS, D), lambda b, t: (b, t, 0)),  # residual x
                    pl.BlockSpec((1, TS, D), lambda b, t: (b, t, 0)),  # q (bf16)
                    pl.BlockSpec((1, S, D), lambda b, t: (b, 0, 0)),   # K (resident per b)
                    pl.BlockSpec((1, S, D), lambda b, t: (b, 0, 0)),   # V (resident per b)
                    mask_spec,
                    const_spec((4, D)), const_spec((1, I)),
                    const_spec((D, D)), const_spec((D, I)), const_spec((I, D)),
                ],
                out_specs=pl.BlockSpec((1, TS, D), lambda b, t: (b, t, 0)),
                scratch_shapes=[pltpu.VMEM((TS, D), bf16)]),
            compiler_params=pltpu.CompilerParams(
                dimension_semantics=("parallel", "parallel"),
                vmem_limit_bytes=min(max(vmem_b, 16 << 20), cap)),
            cost_estimate=cost_b,
        )(x, q_l, k_l, v_l, mask3, vec_b, b1, wo_t, w1_t, w2_t)

        return out, k_l, v_l

    try:
        out, k_l, v_l = _run(True)        # single-buffered constant weights
    except Exception:
        out, k_l, v_l = _run(False)       # safe fallback: default double-buffering

    # KV cache: lane-dense (B, S, H, HD) is a pure reshape (no HBM transpose);
    # PyTorch's (B, H, S, HD) layout available on request.
    k_cache = k_l.reshape(B, S, H, HD)
    v_cache = v_l.reshape(B, S, H, HD)
    if cache_layout == "bhsd":
        k_cache = k_cache.transpose(0, 2, 1, 3)
        v_cache = v_cache.transpose(0, 2, 1, 3)
    return out, k_cache, v_cache


def reference_decoder_layer(x, attn_mask, params, num_heads):
    """Pure-JAX f32 reference mirroring the PyTorch forward (eval mode)."""
    B, S, D = x.shape
    HD = D // num_heads

    def ln(t, g, b):
        mu = t.mean(-1, keepdims=True)
        var = ((t - mu) ** 2).mean(-1, keepdims=True)
        return (t - mu) / jnp.sqrt(var + 1e-5) * g + b

    h = ln(x, params["ln1_g"], params["ln1_b"])
    q = (h @ params["wq"].T + params["bq"]) * (HD ** -0.5)
    k = h @ params["wk"].T + params["bk"]
    v = h @ params["wv"].T + params["bv"]

    def split(t):
        return t.reshape(B, S, num_heads, HD).transpose(0, 2, 1, 3)

    qh, kh, vh = split(q), split(k), split(v)
    sc = jnp.einsum("bhqd,bhkd->bhqk", qh, kh) + attn_mask
    pr = jax.nn.softmax(sc, axis=-1)
    a = jnp.einsum("bhqk,bhkd->bhqd", pr, vh)
    a = a.transpose(0, 2, 1, 3).reshape(B, S, D)
    a = a @ params["wo"].T + params["bo"]
    x = x + a

    h2 = ln(x, params["ln2_g"], params["ln2_b"])
    f = jax.nn.gelu(h2 @ params["w1"].T + params["b1"], approximate=False)
    f = f @ params["w2"].T + params["b2"]
    return x + f, kh, vh


if __name__ == "__main__":
    # Small BioGPT-like config.
    B, S, D = 2, 8, 32
    num_heads = 4
    intermediate = 64

    key = jax.random.PRNGKey(0)
    keys = jax.random.split(key, 16)

    def w(k, shape, scale=0.02):
        return (scale * jax.random.normal(k, shape)).astype(jnp.float32)

    params = {
        "ln1_g": jnp.ones((1, D), jnp.float32),
        "ln1_b": jnp.zeros((1, D), jnp.float32),
        "wq": w(keys[0], (D, D)), "bq": w(keys[1], (1, D)),
        "wk": w(keys[2], (D, D)), "bk": w(keys[3], (1, D)),
        "wv": w(keys[4], (D, D)), "bv": w(keys[5], (1, D)),
        "wo": w(keys[6], (D, D)), "bo": w(keys[7], (1, D)),
        "ln2_g": jnp.ones((1, D), jnp.float32),
        "ln2_b": jnp.zeros((1, D), jnp.float32),
        "w1": w(keys[8], (intermediate, D)), "b1": w(keys[9], (1, intermediate)),
        "w2": w(keys[10], (D, intermediate)), "b2": w(keys[11], (1, D)),
    }

    x = jax.random.normal(keys[12], (B, S, D), dtype=jnp.float32)

    # Causal additive attention mask, shared across batch: (1, 1, S, S).
    causal = jnp.tril(jnp.ones((S, S), jnp.float32))
    attn_mask = jnp.where(causal == 1.0, 0.0, -1e9)[None, None]

    out, k_cache, v_cache = biogpt_decoder_layer(x, attn_mask, params, num_heads)
    out = jax.block_until_ready(out)
    k_cache = jax.block_until_ready(k_cache)
    v_cache = jax.block_until_ready(v_cache)

    # Correctness check against a pure-JAX f32 reference (bf16 matmuls +
    # tanh-GELU + approx reciprocal => loosened tolerance).
    ref_out, ref_k, ref_v = reference_decoder_layer(x, attn_mask, params, num_heads)
    ref_k_bshd = ref_k.transpose(0, 2, 1, 3)   # (B, S, H, HD)
    ref_v_bshd = ref_v.transpose(0, 2, 1, 3)
    assert jnp.allclose(out, ref_out, atol=2e-2, rtol=2e-2), "hidden mismatch"
    assert jnp.allclose(k_cache, ref_k_bshd, atol=2e-2, rtol=2e-2), "k cache mismatch"
    assert jnp.allclose(v_cache, ref_v_bshd, atol=2e-2, rtol=2e-2), "v cache mismatch"

    print("KERNEL_OK")
</pallas_src>

<mosaic_0001>
module attributes {stable_mosaic.version = 11 : i64} {
  func.func @_qkv_kernel(%arg0: i32, %arg1: i32, %arg2: memref<1x8x32xf32, #tpu.memory_space<vmem>>, %arg3: memref<5x32xf32, #tpu.memory_space<vmem>>, %arg4: memref<32x32xbf16, #tpu.memory_space<vmem>>, %arg5: memref<32x32xbf16, #tpu.memory_space<vmem>>, %arg6: memref<32x32xbf16, #tpu.memory_space<vmem>>, %arg7: memref<1x8x32xbf16, #tpu.memory_space<vmem>>, %arg8: memref<1x8x32xf32, #tpu.memory_space<vmem>>, %arg9: memref<1x8x32xf32, #tpu.memory_space<vmem>>) attributes {dimension_semantics = [#tpu.dimension_semantics<parallel>, #tpu.dimension_semantics<parallel>], iteration_bounds = array<i64: 2, 1>, scalar_prefetch = 0 : i64, scratch_operands = 0 : i64, tpu.core_type = #tpu.core_type<tc>, window_params = [{transform_indices = @transform_0, window_bounds = array<i64: 1, 8, 32>}, {pipeline_mode = #tpu.pipeline_mode<synchronous>, transform_indices = @transform_1, window_bounds = array<i64: 5, 32>}, {pipeline_mode = #tpu.pipeline_mode<synchronous>, transform_indices = @transform_2, window_bounds = array<i64: 32, 32>}, {pipeline_mode = #tpu.pipeline_mode<synchronous>, transform_indices = @transform_3, window_bounds = array<i64: 32, 32>}, {pipeline_mode = #tpu.pipeline_mode<synchronous>, transform_indices = @transform_4, window_bounds = array<i64: 32, 32>}, {transform_indices = @transform_5, window_bounds = array<i64: 1, 8, 32>}, {transform_indices = @transform_6, window_bounds = array<i64: 1, 8, 32>}, {transform_indices = @transform_7, window_bounds = array<i64: 1, 8, 32>}]} {
    %c0 = arith.constant 0 : index
    %c0_0 = arith.constant 0 : index
    %c0_1 = arith.constant 0 : index
    %0 = vector.load %arg2[%c0, %c0_0, %c0_1] : memref<1x8x32xf32, #tpu.memory_space<vmem>>, vector<1x8x32xf32>
    %1 = vector.shape_cast %0 : vector<1x8x32xf32> to vector<8x32xf32>
    %c0_2 = arith.constant 0 : index
    %c0_3 = arith.constant 0 : index
    %2 = vector.load %arg3[%c0_2, %c0_3] : memref<5x32xf32, #tpu.memory_space<vmem>>, vector<1x32xf32>
    %c1 = arith.constant 1 : index
    %c0_4 = arith.constant 0 : index
    %3 = vector.load %arg3[%c1, %c0_4] : memref<5x32xf32, #tpu.memory_space<vmem>>, vector<1x32xf32>
    %cst = arith.constant dense<0.000000e+00> : vector<8xf32>
    %4 = vector.multi_reduction <add>, %1, %cst [1] : vector<8x32xf32> to vector<8xf32>
    %5 = vector.shape_cast %4 : vector<8xf32> to vector<8x1xf32>
    %cst_5 = arith.constant 3.200000e+01 : f32
    %6 = vector.broadcast %cst_5 : f32 to vector<8x1xf32>
    %7 = arith.divf %5, %6 : vector<8x1xf32>
    %8 = vector.broadcast %7 : vector<8x1xf32> to vector<8x32xf32>
    %9 = arith.subf %1, %8 : vector<8x32xf32>
    %10 = arith.mulf %9, %9 : vector<8x32xf32>
    %cst_6 = arith.constant dense<0.000000e+00> : vector<8xf32>
    %11 = vector.multi_reduction <add>, %10, %cst_6 [1] : vector<8x32xf32> to vector<8xf32>
    %12 = vector.shape_cast %11 : vector<8xf32> to vector<8x1xf32>
    %cst_7 = arith.constant 3.200000e+01 : f32
    %13 = vector.broadcast %cst_7 : f32 to vector<8x1xf32>
    %14 = arith.divf %12, %13 : vector<8x1xf32>
    %cst_8 = arith.constant 9.99999974E-6 : f32
    %15 = vector.broadcast %cst_8 : f32 to vector<8x1xf32>
    %16 = arith.addf %14, %15 : vector<8x1xf32>
    %17 = math.rsqrt %16 : vector<8x1xf32>
    %18 = vector.broadcast %17 : vector<8x1xf32> to vector<8x32xf32>
    %19 = arith.mulf %9, %18 : vector<8x32xf32>
    %20 = vector.broadcast %2 : vector<1x32xf32> to vector<8x32xf32>
    %21 = arith.mulf %19, %20 : vector<8x32xf32>
    %22 = vector.broadcast %3 : vector<1x32xf32> to vector<8x32xf32>
    %23 = arith.addf %21, %22 : vector<8x32xf32>
    %24 = arith.truncf %23 : vector<8x32xf32> to vector<8x32xbf16>
    %c0_9 = arith.constant 0 : index
    %c0_10 = arith.constant 0 : index
    %25 = vector.load %arg4[%c0_9, %c0_10] : memref<32x32xbf16, #tpu.memory_space<vmem>>, vector<32x32xbf16>
    %cst_11 = arith.constant dense<0.000000e+00> : vector<8x32xf32>
    %26 = tpu.matmul %24, %25, %cst_11 {dimension_numbers = #tpu.dot_dimension_numbers<[1], [0], [0], [1], [0, 0, 1, 1], [], []>} : vector<8x32xbf16>, vector<32x32xbf16>, vector<8x32xf32> -> vector<8x32xf32>
    %c2 = arith.constant 2 : index
    %c0_12 = arith.constant 0 : index
    %27 = vector.load %arg3[%c2, %c0_12] : memref<5x32xf32, #tpu.memory_space<vmem>>, vector<1x32xf32>
    %28 = vector.broadcast %27 : vector<1x32xf32> to vector<8x32xf32>
    %29 = arith.addf %26, %28 : vector<8x32xf32>
    %c0_13 = arith.constant 0 : index
    %c0_14 = arith.constant 0 : index
    %30 = vector.load %arg5[%c0_13, %c0_14] : memref<32x32xbf16, #tpu.memory_space<vmem>>, vector<32x32xbf16>
    %cst_15 = arith.constant dense<0.000000e+00> : vector<8x32xf32>
    %31 = tpu.matmul %24, %30, %cst_15 {dimension_numbers = #tpu.dot_dimension_numbers<[1], [0], [0], [1], [0, 0, 1, 1], [], []>} : vector<8x32xbf16>, vector<32x32xbf16>, vector<8x32xf32> -> vector<8x32xf32>
    %c3 = arith.constant 3 : index
    %c0_16 = arith.constant 0 : index
    %32 = vector.load %arg3[%c3, %c0_16] : memref<5x32xf32, #tpu.memory_space<vmem>>, vector<1x32xf32>
    %33 = vector.broadcast %32 : vector<1x32xf32> to vector<8x32xf32>
    %34 = arith.addf %31, %33 : vector<8x32xf32>
    %c0_17 = arith.constant 0 : index
    %c0_18 = arith.constant 0 : index
    %35 = vector.load %arg6[%c0_17, %c0_18] : memref<32x32xbf16, #tpu.memory_space<vmem>>, vector<32x32xbf16>
    %cst_19 = arith.constant dense<0.000000e+00> : vector<8x32xf32>
    %36 = tpu.matmul %24, %35, %cst_19 {dimension_numbers = #tpu.dot_dimension_numbers<[1], [0], [0], [1], [0, 0, 1, 1], [], []>} : vector<8x32xbf16>, vector<32x32xbf16>, vector<8x32xf32> -> vector<8x32xf32>
    %c4 = arith.constant 4 : index
    %c0_20 = arith.constant 0 : index
    %37 = vector.load %arg3[%c4, %c0_20] : memref<5x32xf32, #tpu.memory_space<vmem>>, vector<1x32xf32>
    %38 = vector.broadcast %37 : vector<1x32xf32> to vector<8x32xf32>
    %39 = arith.addf %36, %38 : vector<8x32xf32>
    %40 = arith.truncf %29 : vector<8x32xf32> to vector<8x32xbf16>
    %c0_21 = arith.constant 0 : index
    %c0_22 = arith.constant 0 : index
    %c0_23 = arith.constant 0 : index
    %41 = vector.load %arg7[%c0_21, %c0_22, %c0_23] : memref<1x8x32xbf16, #tpu.memory_space<vmem>>, vector<1x8x32xbf16>
    %42 = vector.shape_cast %41 : vector<1x8x32xbf16> to vector<8x32xbf16>
    %43 = vector.shape_cast %40 : vector<8x32xbf16> to vector<1x8x32xbf16>
    tpu.vector_store %arg7[%c0_21, %c0_22, %c0_23], %43 {strides = array<i32>} : memref<1x8x32xbf16, #tpu.memory_space<vmem>>, vector<1x8x32xbf16>,
    %c0_24 = arith.constant 0 : index
    %c0_25 = arith.constant 0 : index
    %c0_26 = arith.constant 0 : index
    %44 = vector.load %arg8[%c0_24, %c0_25, %c0_26] : memref<1x8x32xf32, #tpu.memory_space<vmem>>, vector<1x8x32xf32>
    %45 = vector.shape_cast %44 : vector<1x8x32xf32> to vector<8x32xf32>
    %46 = vector.shape_cast %34 : vector<8x32xf32> to vector<1x8x32xf32>
    tpu.vector_store %arg8[%c0_24, %c0_25, %c0_26], %46 {strides = array<i32>} : memref<1x8x32xf32, #tpu.memory_space<vmem>>, vector<1x8x32xf32>,
    %c0_27 = arith.constant 0 : index
    %c0_28 = arith.constant 0 : index
    %c0_29 = arith.constant 0 : index
    %47 = vector.load %arg9[%c0_27, %c0_28, %c0_29] : memref<1x8x32xf32, #tpu.memory_space<vmem>>, vector<1x8x32xf32>
    %48 = vector.shape_cast %47 : vector<1x8x32xf32> to vector<8x32xf32>
    %49 = vector.shape_cast %39 : vector<8x32xf32> to vector<1x8x32xf32>
    tpu.vector_store %arg9[%c0_27, %c0_28, %c0_29], %49 {strides = array<i32>} : memref<1x8x32xf32, #tpu.memory_space<vmem>>, vector<1x8x32xf32>,
    return
  }
  func.func @transform_0(%arg0: i32, %arg1: i32) -> (i32, i32, i32) {
    %c0_i32 = arith.constant 0 : i32
    %c0_i32_0 = arith.constant 0 : i32
    return %arg0, %arg1, %c0_i32 : i32, i32, i32
  }
  func.func @transform_1(%arg0: i32, %arg1: i32) -> (i32, i32) {
    %c0_i32 = arith.constant 0 : i32
    %c0_i32_0 = arith.constant 0 : i32
    %c0_i32_1 = arith.constant 0 : i32
    return %c0_i32, %c0_i32_0 : i32, i32
  }
  func.func @transform_2(%arg0: i32, %arg1: i32) -> (i32, i32) {
    %c0_i32 = arith.constant 0 : i32
    %c0_i32_0 = arith.constant 0 : i32
    %c0_i32_1 = arith.constant 0 : i32
    return %c0_i32, %c0_i32_0 : i32, i32
  }
  func.func @transform_3(%arg0: i32, %arg1: i32) -> (i32, i32) {
    %c0_i32 = arith.constant 0 : i32
    %c0_i32_0 = arith.constant 0 : i32
    %c0_i32_1 = arith.constant 0 : i32
    return %c0_i32, %c0_i32_0 : i32, i32
  }
  func.func @transform_4(%arg0: i32, %arg1: i32) -> (i32, i32) {
    %c0_i32 = arith.constant 0 : i32
    %c0_i32_0 = arith.constant 0 : i32
    %c0_i32_1 = arith.constant 0 : i32
    return %c0_i32, %c0_i32_0 : i32, i32
  }
  func.func @transform_5(%arg0: i32, %arg1: i32) -> (i32, i32, i32) {
    %c0_i32 = arith.constant 0 : i32
    %c0_i32_0 = arith.constant 0 : i32
    return %arg0, %arg1, %c0_i32 : i32, i32, i32
  }
  func.func @transform_6(%arg0: i32, %arg1: i32) -> (i32, i32, i32) {
    %c0_i32 = arith.constant 0 : i32
    %c0_i32_0 = arith.constant 0 : i32
    return %arg0, %arg1, %c0_i32 : i32, i32, i32
  }
  func.func @transform_7(%arg0: i32, %arg1: i32) -> (i32, i32, i32) {
    %c0_i32 = arith.constant 0 : i32
    %c0_i32_0 = arith.constant 0 : i32
    return %arg0, %arg1, %c0_i32 : i32, i32, i32
  }
}

module attributes {stable_mosaic.version = 11 : i64} {
  func.func @_qkv_kernel(%arg0: i32, %arg1: i32, %arg2: memref<1x8x32xf32, #tpu.memory_space<vmem>>, %arg3: memref<5x32xf32, #tpu.memory_space<vmem>>, %arg4: memref<32x32xbf16, #tpu.memory_space<vmem>>, %arg5: memref<32x32xbf16, #tpu.memory_space<vmem>>, %arg6: memref<32x32xbf16, #tpu.memory_space<vmem>>, %arg7: memref<1x8x32xbf16, #tpu.memory_space<vmem>>, %arg8: memref<1x8x32xf32, #tpu.memory_space<vmem>>, %arg9: memref<1x8x32xf32, #tpu.memory_space<vmem>>) attributes {dimension_semantics = [#tpu.dimension_semantics<parallel>, #tpu.dimension_semantics<parallel>], iteration_bounds = array<i64: 2, 1>, scalar_prefetch = 0 : i64, scratch_operands = 0 : i64, tpu.core_type = #tpu.core_type<tc>, window_params = [{transform_indices = @transform_0, window_bounds = array<i64: 1, 8, 32>}, {pipeline_mode = #tpu.pipeline_mode<synchronous>, transform_indices = @transform_1, window_bounds = array<i64: 5, 32>}, {pipeline_mode = #tpu.pipeline_mode<synchronous>, transform_indices = @transform_2, window_bounds = array<i64: 32, 32>}, {pipeline_mode = #tpu.pipeline_mode<synchronous>, transform_indices = @transform_3, window_bounds = array<i64: 32, 32>}, {pipeline_mode = #tpu.pipeline_mode<synchronous>, transform_indices = @transform_4, window_bounds = array<i64: 32, 32>}, {transform_indices = @transform_5, window_bounds = array<i64: 1, 8, 32>}, {transform_indices = @transform_6, window_bounds = array<i64: 1, 8, 32>}, {transform_indices = @transform_7, window_bounds = array<i64: 1, 8, 32>}]} {
    %c0 = arith.constant 0 : index
    %c0_0 = arith.constant 0 : index
    %c0_1 = arith.constant 0 : index
    %0 = vector.load %arg2[%c0, %c0_0, %c0_1] : memref<1x8x32xf32, #tpu.memory_space<vmem>>, vector<1x8x32xf32>
    %1 = vector.shape_cast %0 : vector<1x8x32xf32> to vector<8x32xf32>
    %c0_2 = arith.constant 0 : index
    %c0_3 = arith.constant 0 : index
    %2 = vector.load %arg3[%c0_2, %c0_3] : memref<5x32xf32, #tpu.memory_space<vmem>>, vector<1x32xf32>
    %c1 = arith.constant 1 : index
    %c0_4 = arith.constant 0 : index
    %3 = vector.load %arg3[%c1, %c0_4] : memref<5x32xf32, #tpu.memory_space<vmem>>, vector<1x32xf32>
    %cst = arith.constant dense<0.000000e+00> : vector<8xf32>
    %4 = vector.multi_reduction <add>, %1, %cst [1] : vector<8x32xf32> to vector<8xf32>
    %5 = vector.shape_cast %4 : vector<8xf32> to vector<8x1xf32>
    %cst_5 = arith.constant 3.200000e+01 : f32
    %6 = vector.broadcast %cst_5 : f32 to vector<8x1xf32>
    %7 = arith.divf %5, %6 : vector<8x1xf32>
    %8 = vector.broadcast %7 : vector<8x1xf32> to vector<8x32xf32>
    %9 = arith.subf %1, %8 : vector<8x32xf32>
    %10 = arith.mulf %9, %9 : vector<8x32xf32>
    %cst_6 = arith.constant dense<0.000000e+00> : vector<8xf32>
    %11 = vector.multi_reduction <add>, %10, %cst_6 [1] : vector<8x32xf32> to vector<8xf32>
    %12 = vector.shape_cast %11 : vector<8xf32> to vector<8x1xf32>
    %cst_7 = arith.constant 3.200000e+01 : f32
    %13 = vector.broadcast %cst_7 : f32 to vector<8x1xf32>
    %14 = arith.divf %12, %13 : vector<8x1xf32>
    %cst_8 = arith.constant 9.99999974E-6 : f32
    %15 = vector.broadcast %cst_8 : f32 to vector<8x1xf32>
    %16 = arith.addf %14, %15 : vector<8x1xf32>
    %17 = math.rsqrt %16 : vector<8x1xf32>
    %18 = vector.broadcast %17 : vector<8x1xf32> to vector<8x32xf32>
    %19 = arith.mulf %9, %18 : vector<8x32xf32>
    %20 = vector.broadcast %2 : vector<1x32xf32> to vector<8x32xf32>
    %21 = arith.mulf %19, %20 : vector<8x32xf32>
    %22 = vector.broadcast %3 : vector<1x32xf32> to vector<8x32xf32>
    %23 = arith.addf %21, %22 : vector<8x32xf32>
    %24 = arith.truncf %23 : vector<8x32xf32> to vector<8x32xbf16>
    %c0_9 = arith.constant 0 : index
    %c0_10 = arith.constant 0 : index
    %25 = vector.load %arg4[%c0_9, %c0_10] : memref<32x32xbf16, #tpu.memory_space<vmem>>, vector<32x32xbf16>
    %cst_11 = arith.constant dense<0.000000e+00> : vector<8x32xf32>
    %26 = tpu.matmul %24, %25, %cst_11 {dimension_numbers = #tpu.dot_dimension_numbers<[1], [0], [0], [1], [0, 0, 1, 1], [], []>} : vector<8x32xbf16>, vector<32x32xbf16>, vector<8x32xf32> -> vector<8x32xf32>
    %c2 = arith.constant 2 : index
    %c0_12 = arith.constant 0 : index
    %27 = vector.load %arg3[%c2, %c0_12] : memref<5x32xf32, #tpu.memory_space<vmem>>, vector<1x32xf32>
    %28 = vector.broadcast %27 : vector<1x32xf32> to vector<8x32xf32>
    %29 = arith.addf %26, %28 : vector<8x32xf32>
    %c0_13 = arith.constant 0 : index
    %c0_14 = arith.constant 0 : index
    %30 = vector.load %arg5[%c0_13, %c0_14] : memref<32x32xbf16, #tpu.memory_space<vmem>>, vector<32x32xbf16>
    %cst_15 = arith.constant dense<0.000000e+00> : vector<8x32xf32>
    %31 = tpu.matmul %24, %30, %cst_15 {dimension_numbers = #tpu.dot_dimension_numbers<[1], [0], [0], [1], [0, 0, 1, 1], [], []>} : vector<8x32xbf16>, vector<32x32xbf16>, vector<8x32xf32> -> vector<8x32xf32>
    %c3 = arith.constant 3 : index
    %c0_16 = arith.constant 0 : index
    %32 = vector.load %arg3[%c3, %c0_16] : memref<5x32xf32, #tpu.memory_space<vmem>>, vector<1x32xf32>
    %33 = vector.broadcast %32 : vector<1x32xf32> to vector<8x32xf32>
    %34 = arith.addf %31, %33 : vector<8x32xf32>
    %c0_17 = arith.constant 0 : index
    %c0_18 = arith.constant 0 : index
    %35 = vector.load %arg6[%c0_17, %c0_18] : memref<32x32xbf16, #tpu.memory_space<vmem>>, vector<32x32xbf16>
    %cst_19 = arith.constant dense<0.000000e+00> : vector<8x32xf32>
    %36 = tpu.matmul %24, %35, %cst_19 {dimension_numbers = #tpu.dot_dimension_numbers<[1], [0], [0], [1], [0, 0, 1, 1], [], []>} : vector<8x32xbf16>, vector<32x32xbf16>, vector<8x32xf32> -> vector<8x32xf32>
    %c4 = arith.constant 4 : index
    %c0_20 = arith.constant 0 : index
    %37 = vector.load %arg3[%c4, %c0_20] : memref<5x32xf32, #tpu.memory_space<vmem>>, vector<1x32xf32>
    %38 = vector.broadcast %37 : vector<1x32xf32> to vector<8x32xf32>
    %39 = arith.addf %36, %38 : vector<8x32xf32>
    %40 = arith.truncf %29 : vector<8x32xf32> to vector<8x32xbf16>
    %c0_21 = arith.constant 0 : index
    %c0_22 = arith.constant 0 : index
    %c0_23 = arith.constant 0 : index
    %41 = vector.load %arg7[%c0_21, %c0_22, %c0_23] : memref<1x8x32xbf16, #tpu.memory_space<vmem>>, vector<1x8x32xbf16>
    %42 = vector.shape_cast %41 : vector<1x8x32xbf16> to vector<8x32xbf16>
    %43 = vector.shape_cast %40 : vector<8x32xbf16> to vector<1x8x32xbf16>
    tpu.vector_store %arg7[%c0_21, %c0_22, %c0_23], %43 {strides = array<i32>} : memref<1x8x32xbf16, #tpu.memory_space<vmem>>, vector<1x8x32xbf16>,
    %c0_24 = arith.constant 0 : index
    %c0_25 = arith.constant 0 : index
    %c0_26 = arith.constant 0 : index
    %44 = vector.load %arg8[%c0_24, %c0_25, %c0_26] : memref<1x8x32xf32, #tpu.memory_space<vmem>>, vector<1x8x32xf32>
    %45 = vector.shape_cast %44 : vector<1x8x32xf32> to vector<8x32xf32>
    %46 = vector.shape_cast %34 : vector<8x32xf32> to vector<1x8x32xf32>
    tpu.vector_store %arg8[%c0_24, %c0_25, %c0_26], %46 {strides = array<i32>} : memref<1x8x32xf32, #tpu.memory_space<vmem>>, vector<1x8x32xf32>,
    %c0_27 = arith.constant 0 : index
    %c0_28 = arith.constant 0 : index
    %c0_29 = arith.constant 0 : index
    %47 = vector.load %arg9[%c0_27, %c0_28, %c0_29] : memref<1x8x32xf32, #tpu.memory_space<vmem>>, vector<1x8x32xf32>
    %48 = vector.shape_cast %47 : vector<1x8x32xf32> to vector<8x32xf32>
    %49 = vector.shape_cast %39 : vector<8x32xf32> to vector<1x8x32xf32>
    tpu.vector_store %arg9[%c0_27, %c0_28, %c0_29], %49 {strides = array<i32>} : memref<1x8x32xf32, #tpu.memory_space<vmem>>, vector<1x8x32xf32>,
    return
  }
  func.func @transform_0(%arg0: i32, %arg1: i32) -> (i32, i32, i32) {
    %c0_i32 = arith.constant 0 : i32
    %c0_i32_0 = arith.constant 0 : i32
    return %arg0, %arg1, %c0_i32 : i32, i32, i32
  }
  func.func @transform_1(%arg0: i32, %arg1: i32) -> (i32, i32) {
    %c0_i32 = arith.constant 0 : i32
    %c0_i32_0 = arith.constant 0 : i32
    %c0_i32_1 = arith.constant 0 : i32
    return %c0_i32, %c0_i32_0 : i32, i32
  }
  func.func @transform_2(%arg0: i32, %arg1: i32) -> (i32, i32) {
    %c0_i32 = arith.constant 0 : i32
    %c0_i32_0 = arith.constant 0 : i32
    %c0_i32_1 = arith.constant 0 : i32
    return %c0_i32, %c0_i32_0 : i32, i32
  }
  func.func @transform_3(%arg0: i32, %arg1: i32) -> (i32, i32) {
    %c0_i32 = arith.constant 0 : i32
    %c0_i32_0 = arith.constant 0 : i32
    %c0_i32_1 = arith.constant 0 : i32
    return %c0_i32, %c0_i32_0 : i32, i32
  }
  func.func @transform_4(%arg0: i32, %arg1: i32) -> (i32, i32) {
    %c0_i32 = arith.constant 0 : i32
    %c0_i32_0 = arith.constant 0 : i32
    %c0_i32_1 = arith.constant 0 : i32
    return %c0_i32, %c0_i32_0 : i32, i32
  }
  func.func @transform_5(%arg0: i32, %arg1: i32) -> (i32, i32, i32) {
    %c0_i32 = arith.constant 0 : i32
    %c0_i32_0 = arith.constant 0 : i32
    return %arg0, %arg1, %c0_i32 : i32, i32, i32
  }
  func.func @transform_6(%arg0: i32, %arg1: i32) -> (i32, i32, i32) {
    %c0_i32 = arith.constant 0 : i32
    %c0_i32_0 = arith.constant 0 : i32
    return %arg0, %arg1, %c0_i32 : i32, i32, i32
  }
  func.func @transform_7(%arg0: i32, %arg1: i32) -> (i32, i32, i32) {
    %c0_i32 = arith.constant 0 : i32
    %c0_i32_0 = arith.constant 0 : i32
    return %arg0, %arg1, %c0_i32 : i32, i32, i32
  }
}

</mosaic_0001>

<bundles_post_ra>
// kernel: tpu_custom_call.1
= control target key start
LH: loop header
LB: loop body
LE: loop exit
PB: predicated region body
PF: predicated region fallthrough
CT: control target
= control target key end

     0   :  { %s1545_s0 = inlined_call_operand.hbm [shape: f32[2,8,32], index: 0, kind: input, shape index: {}]   ;;  %s1546_s1 = inlined_call_operand.hbm [shape: f32[5,32], index: 1, kind: input, shape index: {}]   ;;  %s1547_s2 = inlined_call_operand.hbm [shape: bf16[32,32], index: 2, kind: input, shape index: {}]   ;;  %s1548_s3 = inlined_call_operand.hbm [shape: bf16[32,32], index: 3, kind: input, shape index: {}]   ;;  %s1549_s4 = inlined_call_operand.hbm [shape: bf16[32,32], index: 4, kind: input, shape index: {}]   ;;  %s1550_s5 = inlined_call_operand.hbm [shape: bf16[2,8,32], index: 5, kind: output, shape index: {0}]   ;;  %s1551_s6 = inlined_call_operand.hbm [shape: f32[2,8,32], index: 6, kind: output, shape index: {1}]   ;;  %s1552_s7 = inlined_call_operand.hbm [shape: f32[2,8,32], index: 7, kind: output, shape index: {2}]  }
   0x1   :  { %1554 = sst [smem:[#allocation20_spill]] %s1545_s0 }
   0x2   :  { %1555 = sst [smem:[#allocation21_spill]] %s1546_s1 }
   0x3   :  { %1556 = sst [smem:[#allocation22_spill]] %s1547_s2 }
   0x4   :  { %1557 = sst [smem:[#allocation23_spill]] %s1548_s3 }
   0x5   :  { %1558 = sst [smem:[#allocation24_spill]] %s1549_s4 }
   0x6   :  { %13 = vsyncpa [#allocation3], 0 }
   0x7   :  { %15 = vsyncpa [#allocation3 + $0x1], 0 }
   0x8   :  { %16 = vsyncpa [#allocation6], 0 }
   0x9   :  { %17 = vsyncpa [#allocation9], 0 }
   0xa   :  { %18 = vsyncpa [#allocation4], 0 }
   0xb   :  { %20 = vsyncpa [#allocation4 + $0x1], 0 }
   0xc   :  { %21 = vsyncpa [#allocation13], 0 }
   0xd   :  { %23 = vsyncpa [#allocation13 + $0x1], 0  ;;  %s1313_s24 = smov 0   ;;  %s1315_s25 = smov 0  }
   0xe   :  { %s1317_s26 = smov 0   ;;  %s1319_s27 = smov 0  }
   0xf   :  { %s1321_s28 = smov 0   ;;  %s1323_s29 = smov 0  }
  0x10 LB: > { %s1344_s30 = sadd.s32 4294967295, %s1264_s29   ;;  %p781_p0 = scmp.ge.s32.totalorder %s1264_s29, 1  ;;  %s1264_s29 = sphi %s1323_s29, %s29_s29   ;;  %s1260_s28 = sphi %s1321_s28, %s1574_s28   ;;  %s1256_s27 = sphi %s1319_s27, %s1573_s27   ;;  %s1252_s26 = sphi %s1317_s26, %s1572_s26   ;;  %s1248_s25 = sphi %s1315_s25, %s1571_s25   ;;  %s1244_s24 = sphi %s1313_s24, %s1570_s24  }
  0x11   : > { %p64_p1 = scmp.eq.s32.totalorder %s1344_s30, 0  ;;  %p242_p2 = scmp.lt.s32.totalorder %s1264_s29, 3 }
  0x12   : > { %s1559_s1 = sld [smem:[#allocation21_spill]]  ;;  %p786_p4 = scmp.ge.s32.totalorder %s1264_s29, 2 }
  0x13   : > { %p1352_p3 = pnand %p781_p0, %p242_p2  ;;  %s1266_s12 = smov [#allocation5]  }
  0x14   : > { %s256_s13 = sshll.u32 %s1266_s12, 4  ;;  %s1562_s3 = sld [smem:[#allocation23_spill]]  ;;  %s257_s13 = int_to_ptr.vmem [resolvable:$true] %s256_s13 }
  0x15   : > { %p863_p5 = pneg %p1352_p3  ;;  %s1267_s18 = smov [#allocation8]  }
  0x16   : > { %s281_s19 = sshll.u32 %s1267_s18, 4  ;;  %s1563_s2 = sld [smem:[#allocation22_spill]]  ;;  %s282_s19 = int_to_ptr.vmem [resolvable:$true] %s281_s19 }
  0x17   : > { %p1361_p6 = pnand %p863_p5, %p64_p1  ;;  %s1268_s23 = smov 64  }
  0x18   : > { %s254_s10 = sshll.u32 %s1559_s1, 4  ;;  %s1269_s8 = smov 4   ;;  %s255_s10 = int_to_ptr.hbm [resolvable:$true] %s254_s10 }
  0x19   : > { %866 = dma.hbm_to_vmem [thread:$0]  (!%p1361_p6), %s255_s10, 128, %s257_s13, [#allocation6]  }
  0x1a   : > { %s279_s17 = sshll.u32 %s1562_s3, 4  ;;  %s1564_s4 = sld [smem:[#allocation24_spill]]  ;;  %s280_s17 = int_to_ptr.hbm [resolvable:$true] %s279_s17 }
  0x1b   : > { %872 = dma.hbm_to_vmem [thread:$0]  (!%p1361_p6), %s280_s17, 256, %s282_s19, [#allocation9], %s1268_s23, %s1268_s23, %s1269_s8  }
  0x1c   : > { %s265_s22 = sshll.u32 %s1563_s2, 4  ;;  %s1270_s13 = smov [#allocation7]   ;;  %s266_s22 = int_to_ptr.hbm [resolvable:$true] %s265_s22 }
  0x1d   : > { %s267_s15 = sshll.u32 %s1270_s13, 4  ;;  %s1271_s16 = smov [#allocation10]   ;;  %s268_s15 = int_to_ptr.vmem [resolvable:$true] %s267_s15 }
  0x1e   : > { %869 = dma.hbm_to_vmem [thread:$0]  (!%p1361_p6), %s266_s22, 256, %s268_s15, [#allocation6], %s1268_s23, %s1268_s23, %s1269_s8  }
  0x1f   : > { %s295_s18 = sshll.u32 %s1271_s16, 4  ;;  %s41_s17 = sadd.s32 1, %s1260_s28  ;;  %s296_s18 = int_to_ptr.vmem [resolvable:$true] %s295_s18 }
  0x20   : > { %s293_s12 = sshll.u32 %s1564_s4, 4  ;;  %s1553_s19 = sadd.s32 4294967294, %s1264_s29   ;;  %s294_s12 = int_to_ptr.hbm [resolvable:$true] %s293_s12 }
  0x21   : > { %875 = dma.hbm_to_vmem [thread:$0]  (!%p1361_p6), %s294_s12, 256, %s296_s18, [#allocation9], %s1268_s23, %s1268_s23, %s1269_s8  }
  0x22   : > { %p43_p7 = scmp.ge.s32.totalorder %s41_s17, 2  ;;  %s50_s20 = sadd.s32 1, %s1252_s26 }
  0x23   : > { %p57_p8 = scmp.ne.s32.totalorder %s1252_s26, %s1248_s25  ;;  %p58_p9 = scmp.eq.s32.totalorder %s1264_s29, 0 }
  0x24   : > { %s1576_s17 = smov (%p43_p7, %s41_s17), 0  ;;  %p63_p10 = scmp.ne.s32.totalorder %s1248_s25, %s1244_s24 }
  0x25   : > { %s45_s21 = ssub.s32 %s1260_s28, %s1576_s17  ;;  %p173_p11 = scmp.eq.s32.totalorder %s1344_s30, 1 }
  0x26   : > { %p48_p12 = scmp.eq.s32.totalorder %s45_s21, 0  ;;  %p1397_p13 = por %p64_p1, %p63_p10 }
  0x27   : > { %p1401_p0 = por %p173_p11, %p57_p8  ;;  %p179_p2 = scmp.eq.s32.totalorder %s1553_s19, 1 }
  0x28   : > { %s1408_s23 = scalar_select %p48_p12, %s1252_s26, %s50_s20  }
  0x29   : > { %p59_p5 = por %p58_p9, %p57_p8  ;;  %p1410_p6 = por %p179_p2, %p63_p10 }
  0x2a   : > { %s309_s9 = sand.u32 1, %s1252_s26   ;;  %s788_s10 = sshll.u32 %s1260_s28, 3 }
  0x2b   : > { %p894_p7 = scmp.lt.s32.totalorder %s1264_s29, 2  ;;  %s787_s12 = sshll.u32 %s309_s9, 3 }
  0x2c   : > { %s1568_s0 = sld [smem:[#allocation20_spill]]  ;;  %s313_s21 = scalar_lea.vmem [#allocation2], %s787_s12 }
  0x2d   : > { %s322_s1 = sshll.u32 %s313_s21, 4  ;;  %p877_p11 = pnand %p894_p7, %p59_p5  ;;  %s323_s1 = int_to_ptr.vmem [resolvable:$true] %s322_s1 }
  0x2e   : > { %s310_s20 = scalar_lea.sflag [#allocation3], %s309_s9  ;;  %s1423_s19 = sand.u32 (!%p1352_p3), 1, %s1248_s25  }
  0x2f   : > { %s1426_s2 = sshll.u32 (!%p1352_p3), %s1423_s19, 3 }
  0x30   : > { %331 = sbr.rel (%p1352_p3) target bundleno = 486 (0x1e6), region = 40  ;;  %s337_s12 = scalar_lea.vmem (!%p1352_p3), [#allocation2], %s1426_s2 }
  0x32   : > { %s318_s16 = scalar_lea.hbm %s1568_s0, %s788_s10  ;;  %s334_s10 = scalar_lea.sflag (!%p1352_p3), [#allocation3], %s1423_s19 }
  0x33   : > { %s320_s18 = sshll.u32 %s318_s16, 4  ;;  %s321_s18 = int_to_ptr.hbm [resolvable:$true] %s320_s18 }
  0x34   : > { %879 = dma.hbm_to_vmem [thread:$0]  (!%p877_p11), %s321_s18, 128, %s323_s1, %s310_s20  }
  0x35   : > { %1223 = dma.done.wait (%p1397_p13), %s334_s10, 128  }
  0x36   : > { %1225 = vsyncadd (%p1397_p13), %s334_s10, 4294967168 }
  0x37   : > { %1227 = dma.done.wait (%p64_p1), [#allocation6], 384  }
  0x38   : > { %1229 = vsyncadd (%p64_p1), [#allocation6], 4294966912 }
  0x39   : > { %1231 = dma.done.wait (%p64_p1), [#allocation9], 512  }
  0x3a   : > { %1233 = vsyncadd (%p64_p1), [#allocation9], 4294966784  ;;  %vm403_vm0 = vcmask 261120   ;;  %v400_v0 = vld [vmem:[%s337_s12] sm:$0xff]  ;;  %v1272_v2 = vmov 32.0   ;;  %v836_v15 = vld [vmem:[#allocation8 + $0x8] sm:$0xff] }
  0x3b   : > { %v404_v1 = vsel %vm403_vm0, %v400_v0, 0.0  ;;  %960 = vrcp.f32 %v1272_v2  ;;  %v834_v14 = vld [vmem:[#allocation7 + $0x8] sm:$0xff]  ;;  %496 = vmatpush.bf16.msra.mxu1 %v836_v15  ;;  %v833_v17 = vld [vmem:[#allocation7] sm:$0xff]  ;;  %v835_v18 = vld [vmem:[#allocation8] sm:$0xff]  ;;  %s829_s1 = sshll.u32 %s1256_s27, 3  ;;  %s828_s11 = sshll.u32 %s1256_s27, 2 }
  0x3c   : > { %405 = vadd.xlane.f32.xlu0 %v404_v1  ;;  %v838_v16 = vld [vmem:[#allocation10 + $0x8] sm:$0xff]  ;;  %465 = vmatpush.bf16.msra.mxu0 %v834_v14  ;;  %v837_v19 = vld [vmem:[#allocation10] sm:$0xff]  ;;  %v955_v29 = vld [vmem:[#allocation5] ss:$0 sm:$0xff]  ;;  %s576_s13 = scalar_lea.hbm %s1551_s6, %s829_s1  ;;  %s795_s15 = sshll.u32 %s1423_s19, 2  ;;  %vm535_vm5 = vcmask 257024  }
  0x3d   : > { %527 = vmatpush.bf16.msra.mxu2 %v838_v16  ;;  %v956_v32 = vld [vmem:[#allocation5 + $0x1] ss:$0 sm:$0xff]  ;;  %s544_s16 = sand.u32 1, %s1344_s30   ;;  %v957_v36 = vld [vmem:[#allocation5 + $0x2] ss:$0 sm:$0xff]  ;;  %s391_s18 = scalar_lea.vmem [#allocation12], %s1426_s2 }
  0x3e   : > { %v958_v37 = vld [vmem:[#allocation5 + $0x3] ss:$0 sm:$0xff]  ;;  %s1455_s21 = sshll.u32 %s391_s18, 4  ;;  %s561_s12 = scalar_lea.hbm %s1550_s5, %s828_s11  ;;  %v959_v43 = vld [vmem:[#allocation5 + $0x4] ss:$0 sm:$0xff]  ;;  %s579_s21 = int_to_ptr.vmem [resolvable:$true] %s1455_s21 }
  0x3f   : > { %497 = vmatpush.bf16.msra.mxu1 %v835_v18  ;;  %s580_s0 = sshll.u32 %s576_s13, 4  ;;  %s1460_s3 = scalar_lea.vmem [#allocation11], %s795_s15  ;;  %s581_s0 = int_to_ptr.hbm [resolvable:$true] %s580_s0 }
  0x40   : > { %466 = vmatpush.bf16.msra.mxu0 %v833_v17  ;;  %s563_s27 = sshll.u32 %s1460_s3, 4  ;;  %s565_s14 = sshll.u32 %s561_s12, 4  ;;  %s1469_s27 = int_to_ptr.vmem [resolvable:$true] %s563_s27  ;;  %s1472_s14 = int_to_ptr.hbm [resolvable:$true] %s565_s14 }
  0x41   : > { %v961_v3 = vpop.eup %960  ;;  %528 = vmatpush.bf16.msra.mxu2 %v837_v19  ;;  %s1467_s4 = scalar_lea.hbm %s1552_s7, %s829_s1  ;;  %s1474_s11 = scalar_lea.sflag [#allocation13], %s544_s16 }
  0x42   : > { %v408_v4 = vmul.f32 32.0, %v961_v3  ;;  %vm412_vm1 = vweird.f32 %v961_v3  ;;  %s1128_s13 = sshra.s32 %s581_s0, 4  ;;  %s1134_s10 = scalar_lea.hbm %s1551_s6, 16  ;;  %s1129_s13 = int_to_ptr.hbm [resolvable:$true] %s1128_s13 }
  0x43   : > { %s1130_s15 = scalar_lea.hbm %s1129_s13, 8  ;;  %p1135_p9 = scmp.lt.s32.totalorder %s1129_s13, %s1551_s6 }
  0x44   : > { %v409_v5 = vsub.f32 1.0, %v408_v4  ;;  %p1131_p1 = scmp.ne.s32.totalorder %s1129_s13, %s1130_s15  ;;  %p1136_p10 = scmp.lt.s32.totalorder %s1134_s10, %s1130_s15 }
  0x46   : > { %v410_v6 = vmul.f32 %v961_v3, %v409_v5  ;;  %p1132_p3 = pnand %p1131_p1, %p1401_p0  ;;  %p1137_p12 = por %p1136_p10, %p1135_p9 }
  0x48   : > { %v411_v7 = vadd.f32 %v961_v3, %v410_v6  ;;  %p1133_p8 = pneg %p1132_p3 }
  0x4a   : > { %v413_v8 = vsel %vm412_vm1, %v961_v3, %v411_v7  ;;  %p1138_p13 = pnand %p1137_p12, %p1133_p8 }
  0xaf   : > { %v406_v9 = vpop.xlane.xlu0 %405 }
  0xb0   : > { %v414_v10 = vmul.f32 %v413_v8, %v406_v9 }
  0xb2   : > { %v415_v11 = vsub.f32 %v400_v0, %v414_v10 }
  0xb4   : > { %v416_v12 = vmul.f32 %v415_v11, %v415_v11 }
  0xb6   : > { %v417_v13 = vsel %vm403_vm0, %v416_v12, 0.0 }
  0xb7   : > { %418 = vadd.xlane.f32.xlu0 %v417_v13 }
 0x12a   : > { %v419_v20 = vpop.xlane.xlu0 %418 }
 0x12b   : > { %v420_v21 = vmul.f32 %v419_v20, %v413_v8 }
 0x12d   : > { %v421_v22 = vadd.f32 1e-05, %v420_v21 }
 0x12f   : > { %962 = vrsqrt.f32 %v421_v22  ;;  %vm428_vm3 = vweird.f32 %v421_v22 }
 0x135   : > { %v963_v23 = vpop.eup %962 }
 0x136   : > { %v423_v24 = vmul.f32 %v963_v23, %v421_v22  ;;  %vm429_vm2 = vweird.f32 %v963_v23 }
 0x137   : > { %vm430_vm4 = vmor %vm428_vm3, %vm429_vm2 }
 0x138   : > { %v424_v25 = vmul.f32 %v963_v23, %v423_v24 }
 0x13a   : > { %v425_v26 = vmul.f32 0.5, %v424_v25 }
 0x13c   : > { %v426_v27 = vsub.f32 1.5, %v425_v26 }
 0x13e   : > { %v427_v28 = vmul.f32 %v963_v23, %v426_v27 }
 0x140   : > { %v431_v30 = vsel %vm430_vm4, %v963_v23, %v427_v28 }
 0x141   : > { %v432_v31 = vmul.f32 %v431_v30, %v415_v11 }
 0x143   : > { %v434_v33 = vmul.f32 %v955_v29, %v432_v31 }
 0x145   : > { %v436_v34 = vadd.f32 %v956_v32, %v434_v33 }
 0x147   : > { %v437_v35 = vpack.c.bf16 %v436_v34, %v436_v34 }
 0x149   : > { %806 = vmatmul.msk.bf16.vlgmr.msra.gmra.mxu0 %vm403_vm0, %v437_v35  ;;  %815 = vmatmul.msk.bf16.vlgmr.msra.gmra.mxu1 %vm403_vm0, %v437_v35 }
 0x14a   : > { %824 = vmatmul.msk.bf16.vlgmr.msra.gmra.mxu2 %vm403_vm0, %v437_v35 }
 0x1c6   : > { %v468_v38 = vpop.f32.mrf.mxu0  ;;  %v499_v39 = vpop.f32.mrf.mxu1 }
 0x1c7   : > { %v469_v40 = vadd.f32 %v957_v36, %v468_v38  ;;  %v500_v41 = vadd.f32 %v958_v37, %v499_v39 }
 0x1c9   : > { %v534_v42 = vpack.c.bf16 %v469_v40, %v469_v40  ;;  %537 = vst.msk [vmem:[%s391_s18] sm:$0xff] %vm403_vm0, %v500_v41 }
 0x1ca   : > { %1141 = shalt.err (!%p1138_p13)
}
 0x1cb   : > { %858 = dma.vmem_to_hbm [thread:$0]  (%p1401_p0), %s579_s21, 128, %s581_s0, %s1474_s11   ;;  %536 = vst.msk [vmem:[%s1460_s3] sm:$0xf] %vm535_vm5, %v534_v42 }
 0x1cc   : > { %s595_s16 = sshll.u32 %s1467_s4, 4  ;;  %s398_s18 = scalar_lea.vmem [#allocation14], %s1426_s2  ;;  %s596_s16 = int_to_ptr.hbm [resolvable:$true] %s595_s16 }
 0x1cd   : > { %s1491_s9 = sshll.u32 %s398_s18, 4  ;;  %s540_s13 = scalar_lea.sflag [#allocation4], %s1423_s19  ;;  %s594_s9 = int_to_ptr.vmem [resolvable:$true] %s1491_s9 }
 0x1ce   : > { %s1156_s15 = sshra.s32 %s1472_s14, 4  ;;  %s1162_s12 = scalar_lea.hbm %s1550_s5, 8  ;;  %s1157_s15 = int_to_ptr.hbm [resolvable:$true] %s1156_s15 }
 0x1cf   : > { %s1158_s1 = scalar_lea.hbm %s1157_s15, 4  ;;  %p1163_p11 = scmp.lt.s32.totalorder %s1157_s15, %s1550_s5 }
 0x1d0   : > { %p1159_p2 = scmp.ne.s32.totalorder %s1157_s15, %s1158_s1  ;;  %p1164_p1 = scmp.lt.s32.totalorder %s1162_s12, %s1158_s1 }
 0x1d2   : > { %p1160_p5 = pnand %p1159_p2, %p1401_p0  ;;  %p1165_p3 = por %p1164_p1, %p1163_p11 }
 0x1d4   : > { %p1161_p7 = pneg %p1160_p5 }
 0x1d6   : > { %p1166_p8 = pnand %p1165_p3, %p1161_p7 }
 0x1d8   : > { %1169 = shalt.err (!%p1166_p8)
}
 0x1d9   : > { %857 = dma.vmem_to_hbm [thread:$0]  (%p1401_p0), %s1469_s27, 64, %s1472_s14, %s540_s13   ;;  %v530_v44 = vpop.f32.mrf.mxu2  ;;  %v470_v46 = vpop.f32.mrf.mxu0 }
 0x1da   : > { %v531_v45 = vadd.f32 %v959_v43, %v530_v44  ;;  %v501_v47 = vpop.f32.mrf.mxu1  ;;  %s1184_s2 = sshra.s32 %s596_s16, 4  ;;  %s1190_s21 = scalar_lea.hbm %s1552_s7, 16  ;;  %s1185_s2 = int_to_ptr.hbm [resolvable:$true] %s1184_s2 }
 0x1db   : > { %s1186_s3 = scalar_lea.hbm %s1185_s2, 8  ;;  %p1191_p13 = scmp.lt.s32.totalorder %s1185_s2, %s1552_s7 }
 0x1dc   : > { %538 = vst.msk [vmem:[%s398_s18] sm:$0xff] %vm403_vm0, %v531_v45  ;;  %p1187_p9 = scmp.ne.s32.totalorder %s1185_s2, %s1186_s3  ;;  %p1192_p2 = scmp.lt.s32.totalorder %s1190_s21, %s1186_s3 }
 0x1de   : > { %p1188_p10 = pnand %p1187_p9, %p1401_p0  ;;  %p1193_p5 = por %p1192_p2, %p1191_p13 }
 0x1e0   : > { %p1189_p12 = pneg %p1188_p10 }
 0x1e2   : > { %p1194_p7 = pnand %p1193_p5, %p1189_p12 }
 0x1e4   : > { %1197 = shalt.err (!%p1194_p7)
}
 0x1e5   : > { %859 = dma.vmem_to_hbm [thread:$0]  (%p1401_p0), %s594_s9, 128, %s596_s16, %s1474_s11   ;;  %v532_v48 = vpop.f32.mrf.mxu2 }
 0x1e6 PF: > { %s607_s18 = sand.u32 1, %s1244_s24   ;;  %p881_p11 = pnand %p786_p4, %p1410_p6 }
 0x1e7   : > { %s608_s13 = scalar_lea.sflag [#allocation4], %s607_s18 }
 0x1e8   : > { %p882_p1 = pneg %p881_p11 }
 0x1ea   : > { %1235 = dma.done.wait (%p882_p1), %s608_s13, 64  }
 0x1eb   : > { %1237 = vsyncadd (%p882_p1), %s608_s13, 4294967232  ;;  %s1569_s15 = sadd.s32 4294967294, %s1264_s29  }
 0x1ec   : > { %s617_s1 = sand.u32 1, %s1569_s15  }
 0x1ed   : > { %s618_s20 = scalar_lea.sflag [#allocation13], %s617_s1 }
 0x1ee   : > { %1239 = dma.done.wait (%p882_p1), %s618_s20, 256  }
 0x1ef   : > { %1241 = vsyncadd (%p882_p1), %s618_s20, 4294967040  ;;  %s29_s29 = sadd.s32 1, %s1264_s29   ;;  %s1570_s24 = smov %s1248_s25 }
 0x1f0   : > { %p26_p0 = scmp.ge.s32.totalorder %s29_s29, 4   ;;  %s1571_s25 = smov %s1252_s26 }
 0x1f1   : > { %s1572_s26 = smov %s1408_s23  ;;  %s1573_s27 = smov %s1260_s28 }
 0x1f2   : > { %s1574_s28 = smov %s1576_s17  ;;  %28 = sbr.rel (!%p26_p0) target bundleno = 16 (0x10), region = 133 }
 0x1f7   :  { %634 = vsyncpa [#allocation3], 1 }
 0x1f8   :  { %636 = vsyncpa [#allocation3 + $0x1], 1 }
 0x1f9   :  { %637 = vsyncpa [#allocation6], 1 }
 0x1fa   :  { %638 = vsyncpa [#allocation9], 1 }
 0x1fb   :  { %639 = vsyncpa [#allocation4], 1 }
 0x1fc   :  { %641 = vsyncpa [#allocation4 + $0x1], 1 }
 0x1fd   :  { %642 = vsyncpa [#allocation13], 1 }
 0x1fe   :  { %644 = vsyncpa [#allocation13 + $0x1], 1 }

// kernel: tpu_custom_call.1
= control target key start
LH: loop header
LB: loop body
LE: loop exit
PB: predicated region body
PF: predicated region fallthrough
CT: control target
= control target key end

     0   :  { %s1545_s0 = inlined_call_operand.hbm [shape: f32[2,8,32], index: 0, kind: input, shape index: {}]   ;;  %s1546_s1 = inlined_call_operand.hbm [shape: f32[5,32], index: 1, kind: input, shape index: {}]   ;;  %s1547_s2 = inlined_call_operand.hbm [shape: bf16[32,32], index: 2, kind: input, shape index: {}]   ;;  %s1548_s3 = inlined_call_operand.hbm [shape: bf16[32,32], index: 3, kind: input, shape index: {}]   ;;  %s1549_s4 = inlined_call_operand.hbm [shape: bf16[32,32], index: 4, kind: input, shape index: {}]   ;;  %s1550_s5 = inlined_call_operand.hbm [shape: bf16[2,8,32], index: 5, kind: output, shape index: {0}]   ;;  %s1551_s6 = inlined_call_operand.hbm [shape: f32[2,8,32], index: 6, kind: output, shape index: {1}]   ;;  %s1552_s7 = inlined_call_operand.hbm [shape: f32[2,8,32], index: 7, kind: output, shape index: {2}]  }
   0x1   :  { %1554 = sst [smem:[#allocation20_spill]] %s1545_s0 }
   0x2   :  { %1555 = sst [smem:[#allocation21_spill]] %s1546_s1 }
   0x3   :  { %1556 = sst [smem:[#allocation22_spill]] %s1547_s2 }
   0x4   :  { %1557 = sst [smem:[#allocation23_spill]] %s1548_s3 }
   0x5   :  { %1558 = sst [smem:[#allocation24_spill]] %s1549_s4 }
   0x6   :  { %13 = vsyncpa [#allocation3], 0 }
   0x7   :  { %15 = vsyncpa [#allocation3 + $0x1], 0 }
   0x8   :  { %16 = vsyncpa [#allocation6], 0 }
   0x9   :  { %17 = vsyncpa [#allocation9], 0 }
   0xa   :  { %18 = vsyncpa [#allocation4], 0 }
   0xb   :  { %20 = vsyncpa [#allocation4 + $0x1], 0 }
   0xc   :  { %21 = vsyncpa [#allocation13], 0 }
   0xd   :  { %23 = vsyncpa [#allocation13 + $0x1], 0  ;;  %s1313_s24 = smov 0   ;;  %s1315_s25 = smov 0  }
   0xe   :  { %s1317_s26 = smov 0   ;;  %s1319_s27 = smov 0  }
   0xf   :  { %s1321_s28 = smov 0   ;;  %s1323_s29 = smov 0  }
  0x10 LB: > { %s1344_s30 = sadd.s32 4294967295, %s1264_s29   ;;  %p781_p0 = scmp.ge.s32.totalorder %s1264_s29, 1  ;;  %s1264_s29 = sphi %s1323_s29, %s29_s29   ;;  %s1260_s28 = sphi %s1321_s28, %s1574_s28   ;;  %s1256_s27 = sphi %s1319_s27, %s1573_s27   ;;  %s1252_s26 = sphi %s1317_s26, %s1572_s26   ;;  %s1248_s25 = sphi %s1315_s25, %s1571_s25   ;;  %s1244_s24 = sphi %s1313_s24, %s1570_s24  }
  0x11   : > { %p64_p1 = scmp.eq.s32.totalorder %s1344_s30, 0  ;;  %p242_p2 = scmp.lt.s32.totalorder %s1264_s29, 3 }
  0x12   : > { %s1559_s1 = sld [smem:[#allocation21_spill]]  ;;  %p786_p4 = scmp.ge.s32.totalorder %s1264_s29, 2 }
  0x13   : > { %p1352_p3 = pnand %p781_p0, %p242_p2  ;;  %s1266_s12 = smov [#allocation5]  }
  0x14   : > { %s256_s13 = sshll.u32 %s1266_s12, 4  ;;  %s1562_s3 = sld [smem:[#allocation23_spill]]  ;;  %s257_s13 = int_to_ptr.vmem [resolvable:$true] %s256_s13 }
  0x15   : > { %p863_p5 = pneg %p1352_p3  ;;  %s1267_s18 = smov [#allocation8]  }
  0x16   : > { %s281_s19 = sshll.u32 %s1267_s18, 4  ;;  %s1563_s2 = sld [smem:[#allocation22_spill]]  ;;  %s282_s19 = int_to_ptr.vmem [resolvable:$true] %s281_s19 }
  0x17   : > { %p1361_p6 = pnand %p863_p5, %p64_p1  ;;  %s1268_s23 = smov 64  }
  0x18   : > { %s254_s10 = sshll.u32 %s1559_s1, 4  ;;  %s1269_s8 = smov 4   ;;  %s255_s10 = int_to_ptr.hbm [resolvable:$true] %s254_s10 }
  0x19   : > { %866 = dma.hbm_to_vmem [thread:$0]  (!%p1361_p6), %s255_s10, 128, %s257_s13, [#allocation6]  }
  0x1a   : > { %s279_s17 = sshll.u32 %s1562_s3, 4  ;;  %s1564_s4 = sld [smem:[#allocation24_spill]]  ;;  %s280_s17 = int_to_ptr.hbm [resolvable:$true] %s279_s17 }
  0x1b   : > { %872 = dma.hbm_to_vmem [thread:$0]  (!%p1361_p6), %s280_s17, 256, %s282_s19, [#allocation9], %s1268_s23, %s1268_s23, %s1269_s8  }
  0x1c   : > { %s265_s22 = sshll.u32 %s1563_s2, 4  ;;  %s1270_s13 = smov [#allocation7]   ;;  %s266_s22 = int_to_ptr.hbm [resolvable:$true] %s265_s22 }
  0x1d   : > { %s267_s15 = sshll.u32 %s1270_s13, 4  ;;  %s1271_s16 = smov [#allocation10]   ;;  %s268_s15 = int_to_ptr.vmem [resolvable:$true] %s267_s15 }
  0x1e   : > { %869 = dma.hbm_to_vmem [thread:$0]  (!%p1361_p6), %s266_s22, 256, %s268_s15, [#allocation6], %s1268_s23, %s1268_s23, %s1269_s8  }
  0x1f   : > { %s295_s18 = sshll.u32 %s1271_s16, 4  ;;  %s41_s17 = sadd.s32 1, %s1260_s28  ;;  %s296_s18 = int_to_ptr.vmem [resolvable:$true] %s295_s18 }
  0x20   : > { %s293_s12 = sshll.u32 %s1564_s4, 4  ;;  %s1553_s19 = sadd.s32 4294967294, %s1264_s29   ;;  %s294_s12 = int_to_ptr.hbm [resolvable:$true] %s293_s12 }
  0x21   : > { %875 = dma.hbm_to_vmem [thread:$0]  (!%p1361_p6), %s294_s12, 256, %s296_s18, [#allocation9], %s1268_s23, %s1268_s23, %s1269_s8  }
  0x22   : > { %p43_p7 = scmp.ge.s32.totalorder %s41_s17, 2  ;;  %s50_s20 = sadd.s32 1, %s1252_s26 }
  0x23   : > { %p57_p8 = scmp.ne.s32.totalorder %s1252_s26, %s1248_s25  ;;  %p58_p9 = scmp.eq.s32.totalorder %s1264_s29, 0 }
  0x24   : > { %s1576_s17 = smov (%p43_p7, %s41_s17), 0  ;;  %p63_p10 = scmp.ne.s32.totalorder %s1248_s25, %s1244_s24 }
  0x25   : > { %s45_s21 = ssub.s32 %s1260_s28, %s1576_s17  ;;  %p173_p11 = scmp.eq.s32.totalorder %s1344_s30, 1 }
  0x26   : > { %p48_p12 = scmp.eq.s32.totalorder %s45_s21, 0  ;;  %p1397_p13 = por %p64_p1, %p63_p10 }
  0x27   : > { %p1401_p0 = por %p173_p11, %p57_p8  ;;  %p179_p2 = scmp.eq.s32.totalorder %s1553_s19, 1 }
  0x28   : > { %s1408_s23 = scalar_select %p48_p12, %s1252_s26, %s50_s20  }
  0x29   : > { %p59_p5 = por %p58_p9, %p57_p8  ;;  %p1410_p6 = por %p179_p2, %p63_p10 }
  0x2a   : > { %s309_s9 = sand.u32 1, %s1252_s26   ;;  %s788_s10 = sshll.u32 %s1260_s28, 3 }
  0x2b   : > { %p894_p7 = scmp.lt.s32.totalorder %s1264_s29, 2  ;;  %s787_s12 = sshll.u32 %s309_s9, 3 }
  0x2c   : > { %s1568_s0 = sld [smem:[#allocation20_spill]]  ;;  %s313_s21 = scalar_lea.vmem [#allocation2], %s787_s12 }
  0x2d   : > { %s322_s1 = sshll.u32 %s313_s21, 4  ;;  %p877_p11 = pnand %p894_p7, %p59_p5  ;;  %s323_s1 = int_to_ptr.vmem [resolvable:$true] %s322_s1 }
  0x2e   : > { %s310_s20 = scalar_lea.sflag [#allocation3], %s309_s9  ;;  %s1423_s19 = sand.u32 (!%p1352_p3), 1, %s1248_s25  }
  0x2f   : > { %s1426_s2 = sshll.u32 (!%p1352_p3), %s1423_s19, 3 }
  0x30   : > { %331 = sbr.rel (%p1352_p3) target bundleno = 486 (0x1e6), region = 40  ;;  %s337_s12 = scalar_lea.vmem (!%p1352_p3), [#allocation2], %s1426_s2 }
  0x32   : > { %s318_s16 = scalar_lea.hbm %s1568_s0, %s788_s10  ;;  %s334_s10 = scalar_lea.sflag (!%p1352_p3), [#allocation3], %s1423_s19 }
  0x33   : > { %s320_s18 = sshll.u32 %s318_s16, 4  ;;  %s321_s18 = int_to_ptr.hbm [resolvable:$true] %s320_s18 }
  0x34   : > { %879 = dma.hbm_to_vmem [thread:$0]  (!%p877_p11), %s321_s18, 128, %s323_s1, %s310_s20  }
  0x35   : > { %1223 = dma.done.wait (%p1397_p13), %s334_s10, 128  }
  0x36   : > { %1225 = vsyncadd (%p1397_p13), %s334_s10, 4294967168 }
  0x37   : > { %1227 = dma.done.wait (%p64_p1), [#allocation6], 384  }
  0x38   : > { %1229 = vsyncadd (%p64_p1), [#allocation6], 4294966912 }
  0x39   : > { %1231 = dma.done.wait (%p64_p1), [#allocation9], 512  }
  0x3a   : > { %1233 = vsyncadd (%p64_p1), [#allocation9], 4294966784  ;;  %vm403_vm0 = vcmask 261120   ;;  %v400_v0 = vld [vmem:[%s337_s12] sm:$0xff]  ;;  %v1272_v2 = vmov 32.0   ;;  %v836_v15 = vld [vmem:[#allocation8 + $0x8] sm:$0xff] }
  0x3b   : > { %v404_v1 = vsel %vm403_vm0, %v400_v0, 0.0  ;;  %960 = vrcp.f32 %v1272_v2  ;;  %v834_v14 = vld [vmem:[#allocation7 + $0x8] sm:$0xff]  ;;  %496 = vmatpush.bf16.msra.mxu1 %v836_v15  ;;  %v833_v17 = vld [vmem:[#allocation7] sm:$0xff]  ;;  %v835_v18 = vld [vmem:[#allocation8] sm:$0xff]  ;;  %s829_s1 = sshll.u32 %s1256_s27, 3  ;;  %s828_s11 = sshll.u32 %s1256_s27, 2 }
  0x3c   : > { %405 = vadd.xlane.f32.xlu0 %v404_v1  ;;  %v838_v16 = vld [vmem:[#allocation10 + $0x8] sm:$0xff]  ;;  %465 = vmatpush.bf16.msra.mxu0 %v834_v14  ;;  %v837_v19 = vld [vmem:[#allocation10] sm:$0xff]  ;;  %v955_v29 = vld [vmem:[#allocation5] ss:$0 sm:$0xff]  ;;  %s576_s13 = scalar_lea.hbm %s1551_s6, %s829_s1  ;;  %s795_s15 = sshll.u32 %s1423_s19, 2  ;;  %vm535_vm5 = vcmask 257024  }
  0x3d   : > { %527 = vmatpush.bf16.msra.mxu2 %v838_v16  ;;  %v956_v32 = vld [vmem:[#allocation5 + $0x1] ss:$0 sm:$0xff]  ;;  %s544_s16 = sand.u32 1, %s1344_s30   ;;  %v957_v36 = vld [vmem:[#allocation5 + $0x2] ss:$0 sm:$0xff]  ;;  %s391_s18 = scalar_lea.vmem [#allocation12], %s1426_s2 }
  0x3e   : > { %v958_v37 = vld [vmem:[#allocation5 + $0x3] ss:$0 sm:$0xff]  ;;  %s1455_s21 = sshll.u32 %s391_s18, 4  ;;  %s561_s12 = scalar_lea.hbm %s1550_s5, %s828_s11  ;;  %v959_v43 = vld [vmem:[#allocation5 + $0x4] ss:$0 sm:$0xff]  ;;  %s579_s21 = int_to_ptr.vmem [resolvable:$true] %s1455_s21 }
  0x3f   : > { %497 = vmatpush.bf16.msra.mxu1 %v835_v18  ;;  %s580_s0 = sshll.u32 %s576_s13, 4  ;;  %s1460_s3 = scalar_lea.vmem [#allocation11], %s795_s15  ;;  %s581_s0 = int_to_ptr.hbm [resolvable:$true] %s580_s0 }
  0x40   : > { %466 = vmatpush.bf16.msra.mxu0 %v833_v17  ;;  %s563_s27 = sshll.u32 %s1460_s3, 4  ;;  %s565_s14 = sshll.u32 %s561_s12, 4  ;;  %s1469_s27 = int_to_ptr.vmem [resolvable:$true] %s563_s27  ;;  %s1472_s14 = int_to_ptr.hbm [resolvable:$true] %s565_s14 }
  0x41   : > { %v961_v3 = vpop.eup %960  ;;  %528 = vmatpush.bf16.msra.mxu2 %v837_v19  ;;  %s1467_s4 = scalar_lea.hbm %s1552_s7, %s829_s1  ;;  %s1474_s11 = scalar_lea.sflag [#allocation13], %s544_s16 }
  0x42   : > { %v408_v4 = vmul.f32 32.0, %v961_v3  ;;  %vm412_vm1 = vweird.f32 %v961_v3  ;;  %s1128_s13 = sshra.s32 %s581_s0, 4  ;;  %s1134_s10 = scalar_lea.hbm %s1551_s6, 16  ;;  %s1129_s13 = int_to_ptr.hbm [resolvable:$true] %s1128_s13 }
  0x43   : > { %s1130_s15 = scalar_lea.hbm %s1129_s13, 8  ;;  %p1135_p9 = scmp.lt.s32.totalorder %s1129_s13, %s1551_s6 }
  0x44   : > { %v409_v5 = vsub.f32 1.0, %v408_v4  ;;  %p1131_p1 = scmp.ne.s32.totalorder %s1129_s13, %s1130_s15  ;;  %p1136_p10 = scmp.lt.s32.totalorder %s1134_s10, %s1130_s15 }
  0x46   : > { %v410_v6 = vmul.f32 %v961_v3, %v409_v5  ;;  %p1132_p3 = pnand %p1131_p1, %p1401_p0  ;;  %p1137_p12 = por %p1136_p10, %p1135_p9 }
  0x48   : > { %v411_v7 = vadd.f32 %v961_v3, %v410_v6  ;;  %p1133_p8 = pneg %p1132_p3 }
  0x4a   : > { %v413_v8 = vsel %vm412_vm1, %v961_v3, %v411_v7  ;;  %p1138_p13 = pnand %p1137_p12, %p1133_p8 }
  0xaf   : > { %v406_v9 = vpop.xlane.xlu0 %405 }
  0xb0   : > { %v414_v10 = vmul.f32 %v413_v8, %v406_v9 }
  0xb2   : > { %v415_v11 = vsub.f32 %v400_v0, %v414_v10 }
  0xb4   : > { %v416_v12 = vmul.f32 %v415_v11, %v415_v11 }
  0xb6   : > { %v417_v13 = vsel %vm403_vm0, %v416_v12, 0.0 }
  0xb7   : > { %418 = vadd.xlane.f32.xlu0 %v417_v13 }
 0x12a   : > { %v419_v20 = vpop.xlane.xlu0 %418 }
 0x12b   : > { %v420_v21 = vmul.f32 %v419_v20, %v413_v8 }
 0x12d   : > { %v421_v22 = vadd.f32 1e-05, %v420_v21 }
 0x12f   : > { %962 = vrsqrt.f32 %v421_v22  ;;  %vm428_vm3 = vweird.f32 %v421_v22 }
 0x135   : > { %v963_v23 = vpop.eup %962 }
 0x136   : > { %v423_v24 = vmul.f32 %v963_v23, %v421_v22  ;;  %vm429_vm2 = vweird.f32 %v963_v23 }
 0x137   : > { %vm430_vm4 = vmor %vm428_vm3, %vm429_vm2 }
 0x138   : > { %v424_v25 = vmul.f32 %v963_v23, %v423_v24 }
 0x13a   : > { %v425_v26 = vmul.f32 0.5, %v424_v25 }
 0x13c   : > { %v426_v27 = vsub.f32 1.5, %v425_v26 }
 0x13e   : > { %v427_v28 = vmul.f32 %v963_v23, %v426_v27 }
 0x140   : > { %v431_v30 = vsel %vm430_vm4, %v963_v23, %v427_v28 }
 0x141   : > { %v432_v31 = vmul.f32 %v431_v30, %v415_v11 }
 0x143   : > { %v434_v33 = vmul.f32 %v955_v29, %v432_v31 }
 0x145   : > { %v436_v34 = vadd.f32 %v956_v32, %v434_v33 }
 0x147   : > { %v437_v35 = vpack.c.bf16 %v436_v34, %v436_v34 }
 0x149   : > { %806 = vmatmul.msk.bf16.vlgmr.msra.gmra.mxu0 %vm403_vm0, %v437_v35  ;;  %815 = vmatmul.msk.bf16.vlgmr.msra.gmra.mxu1 %vm403_vm0, %v437_v35 }
 0x14a   : > { %824 = vmatmul.msk.bf16.vlgmr.msra.gmra.mxu2 %vm403_vm0, %v437_v35 }
 0x1c6   : > { %v468_v38 = vpop.f32.mrf.mxu0  ;;  %v499_v39 = vpop.f32.mrf.mxu1 }
 0x1c7   : > { %v469_v40 = vadd.f32 %v957_v36, %v468_v38  ;;  %v500_v41 = vadd.f32 %v958_v37, %v499_v39 }
 0x1c9   : > { %v534_v42 = vpack.c.bf16 %v469_v40, %v469_v40  ;;  %537 = vst.msk [vmem:[%s391_s18] sm:$0xff] %vm403_vm0, %v500_v41 }
 0x1ca   : > { %1141 = shalt.err (!%p1138_p13)
}
 0x1cb   : > { %858 = dma.vmem_to_hbm [thread:$0]  (%p1401_p0), %s579_s21, 128, %s581_s0, %s1474_s11   ;;  %536 = vst.msk [vmem:[%s1460_s3] sm:$0xf] %vm535_vm5, %v534_v42 }
 0x1cc   : > { %s595_s16 = sshll.u32 %s1467_s4, 4  ;;  %s398_s18 = scalar_lea.vmem [#allocation14], %s1426_s2  ;;  %s596_s16 = int_to_ptr.hbm [resolvable:$true] %s595_s16 }
 0x1cd   : > { %s1491_s9 = sshll.u32 %s398_s18, 4  ;;  %s540_s13 = scalar_lea.sflag [#allocation4], %s1423_s19  ;;  %s594_s9 = int_to_ptr.vmem [resolvable:$true] %s1491_s9 }
 0x1ce   : > { %s1156_s15 = sshra.s32 %s1472_s14, 4  ;;  %s1162_s12 = scalar_lea.hbm %s1550_s5, 8  ;;  %s1157_s15 = int_to_ptr.hbm [resolvable:$true] %s1156_s15 }
 0x1cf   : > { %s1158_s1 = scalar_lea.hbm %s1157_s15, 4  ;;  %p1163_p11 = scmp.lt.s32.totalorder %s1157_s15, %s1550_s5 }
 0x1d0   : > { %p1159_p2 = scmp.ne.s32.totalorder %s1157_s15, %s1158_s1  ;;  %p1164_p1 = scmp.lt.s32.totalorder %s1162_s12, %s1158_s1 }
 0x1d2   : > { %p1160_p5 = pnand %p1159_p2, %p1401_p0  ;;  %p1165_p3 = por %p1164_p1, %p1163_p11 }
 0x1d4   : > { %p1161_p7 = pneg %p1160_p5 }
 0x1d6   : > { %p1166_p8 = pnand %p1165_p3, %p1161_p7 }
 0x1d8   : > { %1169 = shalt.err (!%p1166_p8)
}
 0x1d9   : > { %857 = dma.vmem_to_hbm [thread:$0]  (%p1401_p0), %s1469_s27, 64, %s1472_s14, %s540_s13   ;;  %v530_v44 = vpop.f32.mrf.mxu2  ;;  %v470_v46 = vpop.f32.mrf.mxu0 }
 0x1da   : > { %v531_v45 = vadd.f32 %v959_v43, %v530_v44  ;;  %v501_v47 = vpop.f32.mrf.mxu1  ;;  %s1184_s2 = sshra.s32 %s596_s16, 4  ;;  %s1190_s21 = scalar_lea.hbm %s1552_s7, 16  ;;  %s1185_s2 = int_to_ptr.hbm [resolvable:$true] %s1184_s2 }
 0x1db   : > { %s1186_s3 = scalar_lea.hbm %s1185_s2, 8  ;;  %p1191_p13 = scmp.lt.s32.totalorder %s1185_s2, %s1552_s7 }
 0x1dc   : > { %538 = vst.msk [vmem:[%s398_s18] sm:$0xff] %vm403_vm0, %v531_v45  ;;  %p1187_p9 = scmp.ne.s32.totalorder %s1185_s2, %s1186_s3  ;;  %p1192_p2 = scmp.lt.s32.totalorder %s1190_s21, %s1186_s3 }
 0x1de   : > { %p1188_p10 = pnand %p1187_p9, %p1401_p0  ;;  %p1193_p5 = por %p1192_p2, %p1191_p13 }
 0x1e0   : > { %p1189_p12 = pneg %p1188_p10 }
 0x1e2   : > { %p1194_p7 = pnand %p1193_p5, %p1189_p12 }
 0x1e4   : > { %1197 = shalt.err (!%p1194_p7)
}
 0x1e5   : > { %859 = dma.vmem_to_hbm [thread:$0]  (%p1401_p0), %s594_s9, 128, %s596_s16, %s1474_s11   ;;  %v532_v48 = vpop.f32.mrf.mxu2 }
 0x1e6 PF: > { %s607_s18 = sand.u32 1, %s1244_s24   ;;  %p881_p11 = pnand %p786_p4, %p1410_p6 }
 0x1e7   : > { %s608_s13 = scalar_lea.sflag [#allocation4], %s607_s18 }
 0x1e8   : > { %p882_p1 = pneg %p881_p11 }
 0x1ea   : > { %1235 = dma.done.wait (%p882_p1), %s608_s13, 64  }
 0x1eb   : > { %1237 = vsyncadd (%p882_p1), %s608_s13, 4294967232  ;;  %s1569_s15 = sadd.s32 4294967294, %s1264_s29  }
 0x1ec   : > { %s617_s1 = sand.u32 1, %s1569_s15  }
 0x1ed   : > { %s618_s20 = scalar_lea.sflag [#allocation13], %s617_s1 }
 0x1ee   : > { %1239 = dma.done.wait (%p882_p1), %s618_s20, 256  }
 0x1ef   : > { %1241 = vsyncadd (%p882_p1), %s618_s20, 4294967040  ;;  %s29_s29 = sadd.s32 1, %s1264_s29   ;;  %s1570_s24 = smov %s1248_s25 }
 0x1f0   : > { %p26_p0 = scmp.ge.s32.totalorder %s29_s29, 4   ;;  %s1571_s25 = smov %s1252_s26 }
 0x1f1   : > { %s1572_s26 = smov %s1408_s23  ;;  %s1573_s27 = smov %s1260_s28 }
 0x1f2   : > { %s1574_s28 = smov %s1576_s17  ;;  %28 = sbr.rel (!%p26_p0) target bundleno = 16 (0x10), region = 133 }
 0x1f7   :  { %634 = vsyncpa [#allocation3], 1 }
 0x1f8   :  { %636 = vsyncpa [#allocation3 + $0x1], 1 }
 0x1f9   :  { %637 = vsyncpa [#allocation6], 1 }
 0x1fa   :  { %638 = vsyncpa [#allocation9], 1 }
 0x1fb   :  { %639 = vsyncpa [#allocation4], 1 }
 0x1fc   :  { %641 = vsyncpa [#allocation4 + $0x1], 1 }
 0x1fd   :  { %642 = vsyncpa [#allocation13], 1 }
 0x1fe   :  { %644 = vsyncpa [#allocation13 + $0x1], 1 }

</bundles_post_ra>
